<compile_context>
chip_gen: v6e
topology: v6e:2x2x1
jax: 0.10.0
libtpu: 0.0.40
codegen_flags: <defaults>
</compile_context>

<pallas_src>
import numpy as np
import jax
import jax.numpy as jnp
from jax import lax
from jax.experimental import pallas as pl
from jax.experimental.pallas import tpu as pltpu

LANE = 128
NEG_INF = -1e30


def _round_up(n, m):
    return ((n + m - 1) // m) * m


def _abstractor_kernel(x_ref, pe_ref,
                       col_lo_ref, col_hi_ref, lane_lo_ref, lane_hi_ref,
                       wq_ref, wk_ref, wv_ref, bq_ref, bk_ref, bv_ref,
                       wo_ref, bo_ref, wenc_ref, benc_ref,
                       out_ref, z_ref):
    """One (batch-block, layer) grid step of the Abstractor forward.

    x_ref, pe_ref, out_ref : (BTb, E_pad) f32   activations (lane padded)
    col_lo/col_hi          : (Rb, 1)      i32   per stacked row: allowed key-column
                                                range [lo, hi]  (same sequence + causal)
    lane_lo/lane_hi        : (Rb, 1)      i32   per stacked row: its head's lane range [lo, hi)
    wq/wk/wv/wo/wenc       : (1, E_pad, E_pad) bf16  (in, out) layout, zero padded;
                                                wq/bq pre-scaled by 1/sqrt(head_dim)
    bq/bk/bv/bo/benc       : (1, 1, E_pad) f32
    z_ref                  : (BTb, E_pad) f32   VMEM-resident activations across layers
    """
    l = pl.program_id(1)

    @pl.when(l == 0)
    def _():
        z_ref[...] = x_ref[...] + pe_ref[...]          # posenc added exactly once

    BTb, E_pad = x_ref.shape
    Rb = col_lo_ref.shape[0]
    H = Rb // BTb

    zb = z_ref[...].astype(jnp.bfloat16)

    # QKV projections (bf16 x bf16 -> f32 acc); 1/sqrt(D) already folded into wq/bq.
    q = jnp.dot(zb, wq_ref[0], preferred_element_type=jnp.float32) + bq_ref[0]
    k = jnp.dot(zb, wk_ref[0], preferred_element_type=jnp.float32) + bk_ref[0]
    v = jnp.dot(zb, wv_ref[0], preferred_element_type=jnp.float32) + bv_ref[0]

    # Head-lane mask (Rb, E_pad): row block h selects lanes [h*D, (h+1)*D).
    lane = lax.broadcasted_iota(jnp.int32, (Rb, E_pad), 1)
    hsel = (lane >= lane_lo_ref[...]) & (lane < lane_hi_ref[...])

    # Stacked-head Q (row r = h*BTb + b*T + t); K and V stay at (BTb, E_pad).
    q_rep = jnp.broadcast_to(q[None], (H, BTb, E_pad)).reshape(Rb, E_pad)
    q_m = jnp.where(hsel, q_rep, 0.0).astype(jnp.bfloat16)
    kb = k.astype(jnp.bfloat16)

    # Scores for all (head, seq, query) rows against the block's BTb keys in one matmul.
    s = lax.dot_general(q_m, kb, (((1,), (1,)), ((), ())),
                        preferred_element_type=jnp.float32)         # (Rb, BTb)

    # Batch separation + causality: key column must lie in [col_lo, col_hi].
    col = lax.broadcasted_iota(jnp.int32, (Rb, BTb), 1)
    ok = (col >= col_lo_ref[...]) & (col <= col_hi_ref[...])
    s = jnp.where(ok, s, NEG_INF)

    # Softmax in f32, deferred normalization.
    m = jnp.max(s, axis=-1, keepdims=True)
    p = jnp.exp(s - m)
    denom = jnp.sum(p, axis=-1, keepdims=True)
    ctx_s = jnp.dot(p.astype(jnp.bfloat16), v.astype(jnp.bfloat16),
                    preferred_element_type=jnp.float32)              # (Rb, E_pad)
    ctx_s = ctx_s * pl.reciprocal(denom, approx=True)

    # Each head owns disjoint lanes: mask BEFORE the block sum, then sum the H row
    # blocks to reassemble the concatenated multi-head context.
    ctx_s = jnp.where(hsel, ctx_s, 0.0)
    ctx = ctx_s.reshape(H, BTb, E_pad).sum(axis=0)                   # (BTb, E_pad)

    # Attention out-projection + encoder linear (lane-dense throughout).
    y = jnp.dot(ctx.astype(jnp.bfloat16), wo_ref[0],
                preferred_element_type=jnp.float32) + bo_ref[0]
    z_new = jnp.dot(y.astype(jnp.bfloat16), wenc_ref[0],
                    preferred_element_type=jnp.float32) + benc_ref[0]
    z_ref[...] = z_new

    @pl.when(l == pl.num_programs(1) - 1)
    def _():
        out_ref[...] = z_new.astype(out_ref.dtype)


def make_posenc(T, E):
    """Matches Abstractor.posenc: interleaved cos/sin rows, transposed to (T, E)."""
    t = np.arange(T)
    n = 10000.0
    rows = []
    for i in range(E // 2):
        rows.append(np.cos(t / n ** (2 * i / E)))
        rows.append(np.sin(t / n ** (2 * i / E)))
    return np.vstack(rows).T.astype(np.float32)          # (T, E)


def make_row_bounds(SB, T, H, D):
    """Tiny per-row bound vectors for one batch block (replace the dense masks)."""
    BTb = SB * T
    Rb = H * BTb
    r = np.arange(Rb)
    head = r // BTb
    b_loc = (r % BTb) // T
    t = r % T
    col_lo = (b_loc * T).astype(np.int32).reshape(Rb, 1)
    col_hi = (b_loc * T + t).astype(np.int32).reshape(Rb, 1)
    lane_lo = (head * D).astype(np.int32).reshape(Rb, 1)
    lane_hi = (head * D + D).astype(np.int32).reshape(Rb, 1)
    return col_lo, col_hi, lane_lo, lane_hi


def init_params(key, depth, width):
    """Deterministic synthetic parameters; weights stored (in, out): y = x @ W + b."""
    params = []
    scale = float(1.0 / np.sqrt(width))
    for l in range(depth):
        keys = jax.random.split(jax.random.fold_in(key, l), 6)
        wq = jax.random.normal(keys[0], (width, width), jnp.float32) * scale
        wk = jax.random.normal(keys[1], (width, width), jnp.float32) * scale
        wv = jax.random.normal(keys[2], (width, width), jnp.float32) * scale
        bq = jnp.zeros((1, width), jnp.float32)
        bk = jnp.zeros((1, width), jnp.float32)
        bv = jnp.zeros((1, width), jnp.float32)
        wo = jax.random.normal(keys[3], (width, width), jnp.float32) * scale
        bo = jnp.zeros((1, width), jnp.float32)
        wenc = jax.random.normal(keys[4], (width, width), jnp.float32) * scale
        benc = jax.random.normal(keys[5], (1, width), jnp.float32) * scale
        params.append((wq, wk, wv, bq, bk, bv, wo, bo, wenc, benc))
    return params


def abstractor_forward(x, params, *, num_heads, batch_blocks=None):
    """Abstractor forward (use_vals=True, dim_out=None) via one pallas_call."""
    B, T, E = x.shape
    H = num_heads
    D = E // H
    L = len(params)
    E_pad = _round_up(E, LANE)   # note: a 256-multiple fills the v6e/v7x MXU when E is large
    scale = float(1.0 / np.sqrt(D))

    # Batch blocking: 2 blocks lets v7x's two TensorCores split the sequences.
    if batch_blocks is None:
        batch_blocks = 2 if (B % 2 == 0 and B >= 2) else 1
    if B % batch_blocks != 0 or ((B // batch_blocks) * T) % 8 != 0:
        batch_blocks = 1                      # full-array block is always legal
    NB = batch_blocks
    SB = B // NB
    BTb = SB * T
    Rb = H * BTb

    def pad2(a, rows, cols, dtype=jnp.float32):
        a = jnp.asarray(a, jnp.float32)
        a = jnp.pad(a, ((0, rows - a.shape[0]), (0, cols - a.shape[1])))
        return a.astype(dtype)

    bf16 = jnp.bfloat16
    # Stack layers, fold 1/sqrt(D) into wq/bq, zero-pad to lane-dense E_pad, cast bf16.
    wq = jnp.stack([pad2(p[0] * scale, E_pad, E_pad, bf16) for p in params])
    wk = jnp.stack([pad2(p[1], E_pad, E_pad, bf16) for p in params])
    wv = jnp.stack([pad2(p[2], E_pad, E_pad, bf16) for p in params])
    bq = jnp.stack([pad2(p[3] * scale, 1, E_pad) for p in params])
    bk = jnp.stack([pad2(p[4], 1, E_pad) for p in params])
    bv = jnp.stack([pad2(p[5], 1, E_pad) for p in params])
    wo = jnp.stack([pad2(p[6], E_pad, E_pad, bf16) for p in params])
    bo = jnp.stack([pad2(p[7], 1, E_pad) for p in params])
    wenc = jnp.stack([pad2(p[8], E_pad, E_pad, bf16) for p in params])
    benc = jnp.stack([pad2(p[9], 1, E_pad) for p in params])

    x2 = pad2(x.reshape(B * T, E), B * T, E_pad)
    pe_blk = pad2(np.tile(make_posenc(T, E), (SB, 1)), BTb, E_pad)
    col_lo, col_hi, lane_lo, lane_hi = (jnp.asarray(a)
                                        for a in make_row_bounds(SB, T, H, D))

    act_spec = pl.BlockSpec((BTb, E_pad), lambda nb, l: (nb, 0))
    pe_spec = pl.BlockSpec((BTb, E_pad), lambda nb, l: (0, 0))
    id_spec = pl.BlockSpec((Rb, 1), lambda nb, l: (0, 0))
    w_spec = pl.BlockSpec((1, E_pad, E_pad), lambda nb, l: (l, 0, 0))
    b_spec = pl.BlockSpec((1, 1, E_pad), lambda nb, l: (l, 0, 0))

    # Scoped-VMEM budget: double-buffered per-layer weights/biases, double-buffered
    # x/out blocks, pe, z scratch, plus score/stacked-Q temporaries, with 2x headroom.
    per_layer = 5 * E_pad * E_pad * 2 + 5 * E_pad * 4
    act = BTb * E_pad * 4
    tmp = Rb * (BTb + 4 * E_pad) * 4
    est = 2 * per_layer + 5 * act + tmp
    vmem_limit = int(min(64 * 2 ** 20, max(16 * 2 ** 20, 2 * est)))

    out = pl.pallas_call(
        _abstractor_kernel,
        out_shape=jax.ShapeDtypeStruct((B * T, E_pad), jnp.float32),
        grid=(NB, L),
        in_specs=[act_spec, pe_spec, id_spec, id_spec, id_spec, id_spec,
                  w_spec, w_spec, w_spec, b_spec, b_spec, b_spec,
                  w_spec, b_spec, w_spec, b_spec],
        out_specs=act_spec,
        scratch_shapes=[pltpu.VMEM((BTb, E_pad), jnp.float32)],
        compiler_params=pltpu.CompilerParams(
            dimension_semantics=("parallel", "arbitrary"),
            vmem_limit_bytes=vmem_limit),
    )(x2, pe_blk, col_lo, col_hi, lane_lo, lane_hi,
      wq, wk, wv, bq, bk, bv, wo, bo, wenc, benc)

    # Strip lane padding, restore (num_seq, len_seq, width); dec is None -> identity.
    return out[:, :E].reshape(B, T, E)


if __name__ == "__main__":
    depth = 1
    B, T, E, H = 2, 8, 32, 4    # num_seq, len_seq, width, heads

    key = jax.random.PRNGKey(0)
    kx, kp = jax.random.split(key)
    x = jax.random.normal(kx, (B, T, E), jnp.float32)
    params = init_params(kp, depth, E)

    out = abstractor_forward(x, params, num_heads=H)
    jax.block_until_ready(out)
    assert out.shape == (B, T, E) and out.dtype == jnp.float32
    assert bool(jnp.isfinite(out).all())
    print("KERNEL_OK")
</pallas_src>

<mosaic_0001>
module attributes {stable_mosaic.version = 11 : i64} {
  func.func @_abstractor_kernel(%arg0: i32, %arg1: i32, %arg2: memref<8x128xf32, #tpu.memory_space<vmem>>, %arg3: memref<8x128xf32, #tpu.memory_space<vmem>>, %arg4: memref<32x1xi32, #tpu.memory_space<vmem>>, %arg5: memref<32x1xi32, #tpu.memory_space<vmem>>, %arg6: memref<32x1xi32, #tpu.memory_space<vmem>>, %arg7: memref<32x1xi32, #tpu.memory_space<vmem>>, %arg8: memref<1x128x128xbf16, #tpu.memory_space<vmem>>, %arg9: memref<1x128x128xbf16, #tpu.memory_space<vmem>>, %arg10: memref<1x128x128xbf16, #tpu.memory_space<vmem>>, %arg11: memref<1x1x128xf32, #tpu.memory_space<vmem>>, %arg12: memref<1x1x128xf32, #tpu.memory_space<vmem>>, %arg13: memref<1x1x128xf32, #tpu.memory_space<vmem>>, %arg14: memref<1x128x128xbf16, #tpu.memory_space<vmem>>, %arg15: memref<1x1x128xf32, #tpu.memory_space<vmem>>, %arg16: memref<1x128x128xbf16, #tpu.memory_space<vmem>>, %arg17: memref<1x1x128xf32, #tpu.memory_space<vmem>>, %arg18: memref<8x128xf32, #tpu.memory_space<vmem>>, %arg19: memref<8x128xf32, #tpu.memory_space<vmem>>) attributes {dimension_semantics = [#tpu.dimension_semantics<parallel>, #tpu.dimension_semantics<arbitrary>], iteration_bounds = array<i64: 2, 1>, scalar_prefetch = 0 : i64, scratch_operands = 1 : i64, tpu.core_type = #tpu.core_type<tc>, window_params = [{transform_indices = @transform_0, window_bounds = array<i64: 8, 128>}, {pipeline_mode = #tpu.pipeline_mode<synchronous>, transform_indices = @transform_1, window_bounds = array<i64: 8, 128>}, {pipeline_mode = #tpu.pipeline_mode<synchronous>, transform_indices = @transform_2, window_bounds = array<i64: 32, 1>}, {pipeline_mode = #tpu.pipeline_mode<synchronous>, transform_indices = @transform_3, window_bounds = array<i64: 32, 1>}, {pipeline_mode = #tpu.pipeline_mode<synchronous>, transform_indices = @transform_4, window_bounds = array<i64: 32, 1>}, {pipeline_mode = #tpu.pipeline_mode<synchronous>, transform_indices = @transform_5, window_bounds = array<i64: 32, 1>}, {transform_indices = @transform_6, window_bounds = array<i64: 1, 128, 128>}, {transform_indices = @transform_7, window_bounds = array<i64: 1, 128, 128>}, {transform_indices = @transform_8, window_bounds = array<i64: 1, 128, 128>}, {transform_indices = @transform_9, window_bounds = array<i64: 1, 1, 128>}, {transform_indices = @transform_10, window_bounds = array<i64: 1, 1, 128>}, {transform_indices = @transform_11, window_bounds = array<i64: 1, 1, 128>}, {transform_indices = @transform_12, window_bounds = array<i64: 1, 128, 128>}, {transform_indices = @transform_13, window_bounds = array<i64: 1, 1, 128>}, {transform_indices = @transform_14, window_bounds = array<i64: 1, 128, 128>}, {transform_indices = @transform_15, window_bounds = array<i64: 1, 1, 128>}, {transform_indices = @transform_16, window_bounds = array<i64: 8, 128>}]} {
    %c0_i32 = arith.constant 0 : i32
    %0 = arith.cmpi eq, %arg1, %c0_i32 : i32
    %1 = arith.extui %0 : i1 to i32
    %c0_i32_0 = arith.constant 0 : i32
    %2 = arith.cmpi ne, %1, %c0_i32_0 : i32
    scf.if %2 {
      %c0_56 = arith.constant 0 : index
      %c0_57 = arith.constant 0 : index
      %90 = vector.load %arg2[%c0_56, %c0_57] : memref<8x128xf32, #tpu.memory_space<vmem>>, vector<8x128xf32>
      %c0_58 = arith.constant 0 : index
      %c0_59 = arith.constant 0 : index
      %91 = vector.load %arg3[%c0_58, %c0_59] : memref<8x128xf32, #tpu.memory_space<vmem>>, vector<8x128xf32>
      %92 = arith.addf %90, %91 : vector<8x128xf32>
      %c0_60 = arith.constant 0 : index
      %c0_61 = arith.constant 0 : index
      %93 = vector.load %arg19[%c0_60, %c0_61] : memref<8x128xf32, #tpu.memory_space<vmem>>, vector<8x128xf32>
      tpu.vector_store %arg19[%c0_60, %c0_61], %92 {strides = array<i32>} : memref<8x128xf32, #tpu.memory_space<vmem>>, vector<8x128xf32>,
    } else {
    }
    %c0 = arith.constant 0 : index
    %c0_1 = arith.constant 0 : index
    %3 = vector.load %arg19[%c0, %c0_1] : memref<8x128xf32, #tpu.memory_space<vmem>>, vector<8x128xf32>
    %4 = arith.truncf %3 : vector<8x128xf32> to vector<8x128xbf16>
    %c0_2 = arith.constant 0 : index
    %c0_3 = arith.constant 0 : index
    %c0_4 = arith.constant 0 : index
    %5 = vector.load %arg8[%c0_2, %c0_3, %c0_4] : memref<1x128x128xbf16, #tpu.memory_space<vmem>>, vector<1x128x128xbf16>
    %6 = vector.shape_cast %5 : vector<1x128x128xbf16> to vector<128x128xbf16>
    %cst = arith.constant dense<0.000000e+00> : vector<8x128xf32>
    %7 = tpu.matmul %4, %6, %cst {dimension_numbers = #tpu.dot_dimension_numbers<[1], [0], [0], [1], [0, 0, 1, 1], [], []>} : vector<8x128xbf16>, vector<128x128xbf16>, vector<8x128xf32> -> vector<8x128xf32>
    %c0_5 = arith.constant 0 : index
    %c0_6 = arith.constant 0 : index
    %c0_7 = arith.constant 0 : index
    %8 = vector.load %arg11[%c0_5, %c0_6, %c0_7] : memref<1x1x128xf32, #tpu.memory_space<vmem>>, vector<1x1x128xf32>
    %9 = vector.shape_cast %8 : vector<1x1x128xf32> to vector<1x128xf32>
    %10 = vector.broadcast %9 : vector<1x128xf32> to vector<8x128xf32>
    %11 = arith.addf %7, %10 : vector<8x128xf32>
    %c0_8 = arith.constant 0 : index
    %c0_9 = arith.constant 0 : index
    %c0_10 = arith.constant 0 : index
    %12 = vector.load %arg9[%c0_8, %c0_9, %c0_10] : memref<1x128x128xbf16, #tpu.memory_space<vmem>>, vector<1x128x128xbf16>
    %13 = vector.shape_cast %12 : vector<1x128x128xbf16> to vector<128x128xbf16>
    %cst_11 = arith.constant dense<0.000000e+00> : vector<8x128xf32>
    %14 = tpu.matmul %4, %13, %cst_11 {dimension_numbers = #tpu.dot_dimension_numbers<[1], [0], [0], [1], [0, 0, 1, 1], [], []>} : vector<8x128xbf16>, vector<128x128xbf16>, vector<8x128xf32> -> vector<8x128xf32>
    %c0_12 = arith.constant 0 : index
    %c0_13 = arith.constant 0 : index
    %c0_14 = arith.constant 0 : index
    %15 = vector.load %arg12[%c0_12, %c0_13, %c0_14] : memref<1x1x128xf32, #tpu.memory_space<vmem>>, vector<1x1x128xf32>
    %16 = vector.shape_cast %15 : vector<1x1x128xf32> to vector<1x128xf32>
    %17 = vector.broadcast %16 : vector<1x128xf32> to vector<8x128xf32>
    %18 = arith.addf %14, %17 : vector<8x128xf32>
    %c0_15 = arith.constant 0 : index
    %c0_16 = arith.constant 0 : index
    %c0_17 = arith.constant 0 : index
    %19 = vector.load %arg10[%c0_15, %c0_16, %c0_17] : memref<1x128x128xbf16, #tpu.memory_space<vmem>>, vector<1x128x128xbf16>
    %20 = vector.shape_cast %19 : vector<1x128x128xbf16> to vector<128x128xbf16>
    %cst_18 = arith.constant dense<0.000000e+00> : vector<8x128xf32>
    %21 = tpu.matmul %4, %20, %cst_18 {dimension_numbers = #tpu.dot_dimension_numbers<[1], [0], [0], [1], [0, 0, 1, 1], [], []>} : vector<8x128xbf16>, vector<128x128xbf16>, vector<8x128xf32> -> vector<8x128xf32>
    %c0_19 = arith.constant 0 : index
    %c0_20 = arith.constant 0 : index
    %c0_21 = arith.constant 0 : index
    %22 = vector.load %arg13[%c0_19, %c0_20, %c0_21] : memref<1x1x128xf32, #tpu.memory_space<vmem>>, vector<1x1x128xf32>
    %23 = vector.shape_cast %22 : vector<1x1x128xf32> to vector<1x128xf32>
    %24 = vector.broadcast %23 : vector<1x128xf32> to vector<8x128xf32>
    %25 = arith.addf %21, %24 : vector<8x128xf32>
    %26 = tpu.iota {dimensions = array<i32: 1>} : vector<32x128xi32>
    %c0_22 = arith.constant 0 : index
    %c0_23 = arith.constant 0 : index
    %27 = vector.load %arg6[%c0_22, %c0_23] : memref<32x1xi32, #tpu.memory_space<vmem>>, vector<32x1xi32>
    %28 = vector.broadcast %27 : vector<32x1xi32> to vector<32x128xi32>
    %29 = arith.cmpi sge, %26, %28 : vector<32x128xi32>
    %c0_24 = arith.constant 0 : index
    %c0_25 = arith.constant 0 : index
    %30 = vector.load %arg7[%c0_24, %c0_25] : memref<32x1xi32, #tpu.memory_space<vmem>>, vector<32x1xi32>
    %31 = vector.broadcast %30 : vector<32x1xi32> to vector<32x128xi32>
    %32 = arith.cmpi slt, %26, %31 : vector<32x128xi32>
    %33 = arith.andi %29, %32 : vector<32x128xi1>
    %34 = vector.shape_cast %11 : vector<8x128xf32> to vector<1x8x128xf32>
    %35 = vector.shape_cast %34 : vector<1x8x128xf32> to vector<1x8x128xf32>
    %36 = vector.broadcast %35 : vector<1x8x128xf32> to vector<4x8x128xf32>
    %37 = vector.shape_cast %36 : vector<4x8x128xf32> to vector<32x128xf32>
    %cst_26 = arith.constant 0.000000e+00 : f32
    %38 = vector.broadcast %cst_26 : f32 to vector<32x128xf32>
    %39 = arith.select %33, %37, %38 : vector<32x128xi1>, vector<32x128xf32>
    %40 = arith.truncf %39 : vector<32x128xf32> to vector<32x128xbf16>
    %41 = arith.truncf %18 : vector<8x128xf32> to vector<8x128xbf16>
    %cst_27 = arith.constant dense<0.000000e+00> : vector<32x8xf32>
    %42 = tpu.matmul %40, %41, %cst_27 {dimension_numbers = #tpu.dot_dimension_numbers<[1], [1], [0], [0], [0, 0, 1, 0], [], []>} : vector<32x128xbf16>, vector<8x128xbf16>, vector<32x8xf32> -> vector<32x8xf32>
    %43 = tpu.iota {dimensions = array<i32: 1>} : vector<32x8xi32>
    %c0_28 = arith.constant 0 : index
    %c0_29 = arith.constant 0 : index
    %44 = vector.load %arg4[%c0_28, %c0_29] : memref<32x1xi32, #tpu.memory_space<vmem>>, vector<32x1xi32>
    %45 = vector.broadcast %44 : vector<32x1xi32> to vector<32x8xi32>
    %46 = arith.cmpi sge, %43, %45 : vector<32x8xi32>
    %c0_30 = arith.constant 0 : index
    %c0_31 = arith.constant 0 : index
    %47 = vector.load %arg5[%c0_30, %c0_31] : memref<32x1xi32, #tpu.memory_space<vmem>>, vector<32x1xi32>
    %48 = vector.broadcast %47 : vector<32x1xi32> to vector<32x8xi32>
    %49 = arith.cmpi sle, %43, %48 : vector<32x8xi32>
    %50 = arith.andi %46, %49 : vector<32x8xi1>
    %cst_32 = arith.constant -1.000000e+30 : f32
    %51 = vector.broadcast %cst_32 : f32 to vector<32x8xf32>
    %52 = arith.select %50, %42, %51 : vector<32x8xi1>, vector<32x8xf32>
    %cst_33 = arith.constant dense<0xFF800000> : vector<32xf32>
    %53 = vector.multi_reduction <maximumf>, %52, %cst_33 [1] : vector<32x8xf32> to vector<32xf32>
    %54 = vector.shape_cast %53 : vector<32xf32> to vector<32x1xf32>
    %55 = vector.broadcast %54 : vector<32x1xf32> to vector<32x8xf32>
    %56 = arith.subf %52, %55 : vector<32x8xf32>
    %57 = math.exp %56 : vector<32x8xf32>
    %cst_34 = arith.constant dense<0.000000e+00> : vector<32xf32>
    %58 = vector.multi_reduction <add>, %57, %cst_34 [1] : vector<32x8xf32> to vector<32xf32>
    %59 = vector.shape_cast %58 : vector<32xf32> to vector<32x1xf32>
    %60 = arith.truncf %57 : vector<32x8xf32> to vector<32x8xbf16>
    %61 = arith.truncf %25 : vector<8x128xf32> to vector<8x128xbf16>
    %cst_35 = arith.constant dense<0.000000e+00> : vector<32x128xf32>
    %62 = tpu.matmul %60, %61, %cst_35 {dimension_numbers = #tpu.dot_dimension_numbers<[1], [0], [0], [1], [0, 0, 1, 1], [], []>} : vector<32x8xbf16>, vector<8x128xbf16>, vector<32x128xf32> -> vector<32x128xf32>
    %63 = tpu.reciprocal %59 {approx = true} : vector<32x1xf32> -> vector<32x1xf32>
    %64 = vector.broadcast %63 : vector<32x1xf32> to vector<32x128xf32>
    %65 = arith.mulf %62, %64 : vector<32x128xf32>
    %cst_36 = arith.constant 0.000000e+00 : f32
    %66 = vector.broadcast %cst_36 : f32 to vector<32x128xf32>
    %67 = arith.select %33, %65, %66 : vector<32x128xi1>, vector<32x128xf32>
    %68 = vector.shape_cast %67 : vector<32x128xf32> to vector<4x8x128xf32>
    %cst_37 = arith.constant dense<0.000000e+00> : vector<8x128xf32>
    %69 = vector.multi_reduction <add>, %68, %cst_37 [0] : vector<4x8x128xf32> to vector<8x128xf32>
    %70 = arith.truncf %69 : vector<8x128xf32> to vector<8x128xbf16>
    %c0_38 = arith.constant 0 : index
    %c0_39 = arith.constant 0 : index
    %c0_40 = arith.constant 0 : index
    %71 = vector.load %arg14[%c0_38, %c0_39, %c0_40] : memref<1x128x128xbf16, #tpu.memory_space<vmem>>, vector<1x128x128xbf16>
    %72 = vector.shape_cast %71 : vector<1x128x128xbf16> to vector<128x128xbf16>
    %cst_41 = arith.constant dense<0.000000e+00> : vector<8x128xf32>
    %73 = tpu.matmul %70, %72, %cst_41 {dimension_numbers = #tpu.dot_dimension_numbers<[1], [0], [0], [1], [0, 0, 1, 1], [], []>} : vector<8x128xbf16>, vector<128x128xbf16>, vector<8x128xf32> -> vector<8x128xf32>
    %c0_42 = arith.constant 0 : index
    %c0_43 = arith.constant 0 : index
    %c0_44 = arith.constant 0 : index
    %74 = vector.load %arg15[%c0_42, %c0_43, %c0_44] : memref<1x1x128xf32, #tpu.memory_space<vmem>>, vector<1x1x128xf32>
    %75 = vector.shape_cast %74 : vector<1x1x128xf32> to vector<1x128xf32>
    %76 = vector.broadcast %75 : vector<1x128xf32> to vector<8x128xf32>
    %77 = arith.addf %73, %76 : vector<8x128xf32>
    %78 = arith.truncf %77 : vector<8x128xf32> to vector<8x128xbf16>
    %c0_45 = arith.constant 0 : index
    %c0_46 = arith.constant 0 : index
    %c0_47 = arith.constant 0 : index
    %79 = vector.load %arg16[%c0_45, %c0_46, %c0_47] : memref<1x128x128xbf16, #tpu.memory_space<vmem>>, vector<1x128x128xbf16>
    %80 = vector.shape_cast %79 : vector<1x128x128xbf16> to vector<128x128xbf16>
    %cst_48 = arith.constant dense<0.000000e+00> : vector<8x128xf32>
    %81 = tpu.matmul %78, %80, %cst_48 {dimension_numbers = #tpu.dot_dimension_numbers<[1], [0], [0], [1], [0, 0, 1, 1], [], []>} : vector<8x128xbf16>, vector<128x128xbf16>, vector<8x128xf32> -> vector<8x128xf32>
    %c0_49 = arith.constant 0 : index
    %c0_50 = arith.constant 0 : index
    %c0_51 = arith.constant 0 : index
    %82 = vector.load %arg17[%c0_49, %c0_50, %c0_51] : memref<1x1x128xf32, #tpu.memory_space<vmem>>, vector<1x1x128xf32>
    %83 = vector.shape_cast %82 : vector<1x1x128xf32> to vector<1x128xf32>
    %84 = vector.broadcast %83 : vector<1x128xf32> to vector<8x128xf32>
    %85 = arith.addf %81, %84 : vector<8x128xf32>
    %c0_52 = arith.constant 0 : index
    %c0_53 = arith.constant 0 : index
    %86 = vector.load %arg19[%c0_52, %c0_53] : memref<8x128xf32, #tpu.memory_space<vmem>>, vector<8x128xf32>
    tpu.vector_store %arg19[%c0_52, %c0_53], %85 {strides = array<i32>} : memref<8x128xf32, #tpu.memory_space<vmem>>, vector<8x128xf32>,
    %c0_i32_54 = arith.constant 0 : i32
    %87 = arith.cmpi eq, %arg1, %c0_i32_54 : i32
    %88 = arith.extui %87 : i1 to i32
    %c0_i32_55 = arith.constant 0 : i32
    %89 = arith.cmpi ne, %88, %c0_i32_55 : i32
    scf.if %89 {
      %c0_56 = arith.constant 0 : index
      %c0_57 = arith.constant 0 : index
      %90 = vector.load %arg18[%c0_56, %c0_57] : memref<8x128xf32, #tpu.memory_space<vmem>>, vector<8x128xf32>
      tpu.vector_store %arg18[%c0_56, %c0_57], %85 {strides = array<i32>} : memref<8x128xf32, #tpu.memory_space<vmem>>, vector<8x128xf32>,
    } else {
    }
    return
  }
  func.func @transform_0(%arg0: i32, %arg1: i32) -> (i32, i32) {
    %c0_i32 = arith.constant 0 : i32
    %c0_i32_0 = arith.constant 0 : i32
    return %arg0, %c0_i32 : i32, i32
  }
  func.func @transform_1(%arg0: i32, %arg1: i32) -> (i32, i32) {
    %c0_i32 = arith.constant 0 : i32
    %c0_i32_0 = arith.constant 0 : i32
    %c0_i32_1 = arith.constant 0 : i32
    return %c0_i32, %c0_i32_0 : i32, i32
  }
  func.func @transform_2(%arg0: i32, %arg1: i32) -> (i32, i32) {
    %c0_i32 = arith.constant 0 : i32
    %c0_i32_0 = arith.constant 0 : i32
    %c0_i32_1 = arith.constant 0 : i32
    return %c0_i32, %c0_i32_0 : i32, i32
  }
  func.func @transform_3(%arg0: i32, %arg1: i32) -> (i32, i32) {
    %c0_i32 = arith.constant 0 : i32
    %c0_i32_0 = arith.constant 0 : i32
    %c0_i32_1 = arith.constant 0 : i32
    return %c0_i32, %c0_i32_0 : i32, i32
  }
  func.func @transform_4(%arg0: i32, %arg1: i32) -> (i32, i32) {
    %c0_i32 = arith.constant 0 : i32
    %c0_i32_0 = arith.constant 0 : i32
    %c0_i32_1 = arith.constant 0 : i32
    return %c0_i32, %c0_i32_0 : i32, i32
  }
  func.func @transform_5(%arg0: i32, %arg1: i32) -> (i32, i32) {
    %c0_i32 = arith.constant 0 : i32
    %c0_i32_0 = arith.constant 0 : i32
    %c0_i32_1 = arith.constant 0 : i32
    return %c0_i32, %c0_i32_0 : i32, i32
  }
  func.func @transform_6(%arg0: i32, %arg1: i32) -> (i32, i32, i32) {
    %c0_i32 = arith.constant 0 : i32
    %c0_i32_0 = arith.constant 0 : i32
    %c0_i32_1 = arith.constant 0 : i32
    return %arg1, %c0_i32, %c0_i32_0 : i32, i32, i32
  }
  func.func @transform_7(%arg0: i32, %arg1: i32) -> (i32, i32, i32) {
    %c0_i32 = arith.constant 0 : i32
    %c0_i32_0 = arith.constant 0 : i32
    %c0_i32_1 = arith.constant 0 : i32
    return %arg1, %c0_i32, %c0_i32_0 : i32, i32, i32
  }
  func.func @transform_8(%arg0: i32, %arg1: i32) -> (i32, i32, i32) {
    %c0_i32 = arith.constant 0 : i32
    %c0_i32_0 = arith.constant 0 : i32
    %c0_i32_1 = arith.constant 0 : i32
    return %arg1, %c0_i32, %c0_i32_0 : i32, i32, i32
  }
  func.func @transform_9(%arg0: i32, %arg1: i32) -> (i32, i32, i32) {
    %c0_i32 = arith.constant 0 : i32
    %c0_i32_0 = arith.constant 0 : i32
    %c0_i32_1 = arith.constant 0 : i32
    return %arg1, %c0_i32, %c0_i32_0 : i32, i32, i32
  }
  func.func @transform_10(%arg0: i32, %arg1: i32) -> (i32, i32, i32) {
    %c0_i32 = arith.constant 0 : i32
    %c0_i32_0 = arith.constant 0 : i32
    %c0_i32_1 = arith.constant 0 : i32
    return %arg1, %c0_i32, %c0_i32_0 : i32, i32, i32
  }
  func.func @transform_11(%arg0: i32, %arg1: i32) -> (i32, i32, i32) {
    %c0_i32 = arith.constant 0 : i32
    %c0_i32_0 = arith.constant 0 : i32
    %c0_i32_1 = arith.constant 0 : i32
    return %arg1, %c0_i32, %c0_i32_0 : i32, i32, i32
  }
  func.func @transform_12(%arg0: i32, %arg1: i32) -> (i32, i32, i32) {
    %c0_i32 = arith.constant 0 : i32
    %c0_i32_0 = arith.constant 0 : i32
    %c0_i32_1 = arith.constant 0 : i32
    return %arg1, %c0_i32, %c0_i32_0 : i32, i32, i32
  }
  func.func @transform_13(%arg0: i32, %arg1: i32) -> (i32, i32, i32) {
    %c0_i32 = arith.constant 0 : i32
    %c0_i32_0 = arith.constant 0 : i32
    %c0_i32_1 = arith.constant 0 : i32
    return %arg1, %c0_i32, %c0_i32_0 : i32, i32, i32
  }
  func.func @transform_14(%arg0: i32, %arg1: i32) -> (i32, i32, i32) {
    %c0_i32 = arith.constant 0 : i32
    %c0_i32_0 = arith.constant 0 : i32
    %c0_i32_1 = arith.constant 0 : i32
    return %arg1, %c0_i32, %c0_i32_0 : i32, i32, i32
  }
  func.func @transform_15(%arg0: i32, %arg1: i32) -> (i32, i32, i32) {
    %c0_i32 = arith.constant 0 : i32
    %c0_i32_0 = arith.constant 0 : i32
    %c0_i32_1 = arith.constant 0 : i32
    return %arg1, %c0_i32, %c0_i32_0 : i32, i32, i32
  }
  func.func @transform_16(%arg0: i32, %arg1: i32) -> (i32, i32) {
    %c0_i32 = arith.constant 0 : i32
    %c0_i32_0 = arith.constant 0 : i32
    return %arg0, %c0_i32 : i32, i32
  }
}

</mosaic_0001>

<bundles_post_ra>
// kernel: tpu_custom_call.1
= control target key start
LH: loop header
LB: loop body
LE: loop exit
PB: predicated region body
PF: predicated region fallthrough
CT: control target
= control target key end

     0   :  { %s2967_s0 = inlined_call_operand.hbm [shape: f32[16,128], index: 0, kind: input, shape index: {}]   ;;  %s2968_s1 = inlined_call_operand.hbm [shape: f32[8,128], index: 1, kind: input, shape index: {}]   ;;  %s2969_s2 = inlined_call_operand.vmem [shape: s32[32,1], index: 2, kind: input, shape index: {}]   ;;  %s2970_s3 = inlined_call_operand.vmem [shape: s32[32,1], index: 3, kind: input, shape index: {}]   ;;  %s2971_s4 = inlined_call_operand.vmem [shape: s32[32,1], index: 4, kind: input, shape index: {}]   ;;  %s2972_s5 = inlined_call_operand.vmem [shape: s32[32,1], index: 5, kind: input, shape index: {}]   ;;  %s2973_s6 = inlined_call_operand.vmem [shape: bf16[1,128,128], index: 6, kind: input, shape index: {}]   ;;  %s2974_s7 = inlined_call_operand.vmem [shape: bf16[1,128,128], index: 7, kind: input, shape index: {}]   ;;  %s2975_s8 = inlined_call_operand.hbm [shape: bf16[1,128,128], index: 8, kind: input, shape index: {}]   ;;  %s2976_s9 = inlined_call_operand.vmem [shape: f32[1,1,128], index: 9, kind: input, shape index: {}]   ;;  %s2977_s10 = inlined_call_operand.vmem [shape: f32[1,1,128], index: 10, kind: input, shape index: {}]   ;;  %s2978_s11 = inlined_call_operand.vmem [shape: f32[1,1,128], index: 11, kind: input, shape index: {}]   ;;  %s2979_s12 = inlined_call_operand.hbm [shape: bf16[1,128,128], index: 12, kind: input, shape index: {}]   ;;  %s2980_s13 = inlined_call_operand.vmem [shape: f32[1,1,128], index: 13, kind: input, shape index: {}]   ;;  %s2981_s14 = inlined_call_operand.hbm [shape: bf16[1,128,128], index: 14, kind: input, shape index: {}]   ;;  %s2982_s15 = inlined_call_operand.vmem [shape: f32[1,1,128], index: 15, kind: input, shape index: {}]   ;;  %s2983_s16 = inlined_call_operand.hbm [shape: f32[16,128], index: 16, kind: output, shape index: {}]  }
   0x1   :  { %2995 = sst [smem:[#allocation23_spill]] %s2967_s0 }
   0x2   :  { %2996 = sst [smem:[#allocation24_spill]] %s2968_s1 }
   0x3   :  { %2997 = sst [smem:[#allocation25_spill]] %s2975_s8 }
   0x4   :  { %2998 = sst [smem:[#allocation26_spill]] %s2979_s12 }
   0x5   :  { %2999 = sst [smem:[#allocation27_spill]] %s2980_s13 }
   0x6   :  { %3000 = sst [smem:[#allocation28_spill]] %s2981_s14 }
   0x7   :  { %3001 = sst [smem:[#allocation29_spill]] %s2982_s15 }
   0x8   :  { %3002 = sst [smem:[#allocation30_spill]] %s2983_s16 }
   0x9   :  { %21 = vsyncpa [#allocation4], 0 }
   0xa   :  { %23 = vsyncpa [#allocation4 + $0x1], 0 }
   0xb   :  { %24 = vsyncpa [#allocation7], 0 }
   0xc   :  { %25 = vsyncpa [#allocation10], 0 }
   0xd   :  { %26 = vsyncpa [#allocation5], 0 }
   0xe   :  { %28 = vsyncpa [#allocation5 + $0x1], 0  ;;  %s2531_s21 = smov 0   ;;  %s2533_s22 = smov 0  }
   0xf   :  { %s2535_s23 = smov 0   ;;  %s2537_s24 = smov 0  }
  0x10   :  { %s2539_s25 = smov 0   ;;  %s2541_s26 = smov 0  }
  0x11 LB: > { %3003 = sst [smem:[#allocation17_spill]] %s2413_s21  ;;  %s2984_s27 = sadd.s32 4294967295, %s2433_s26   ;;  %s2433_s26 = sphi %s2541_s26, %s34_s26   ;;  %s2429_s25 = sphi %s2539_s25, %s3044_s25   ;;  %s2425_s24 = sphi %s2537_s24, %s3043_s24   ;;  %s2421_s23 = sphi %s2535_s23, %s3047_s23   ;;  %s2417_s22 = sphi %s2533_s22, %s3046_s22   ;;  %s2413_s21 = sphi %s2531_s21, %s3045_s21  }
  0x12   : > { %3004 = sst [smem:[#allocation18_spill]] %s2425_s24  ;;  %p1804_p0 = scmp.ge.s32.totalorder %s2433_s26, 1 }
  0x13   : > { %3005 = sst [smem:[#allocation19_spill]] %s2429_s25  ;;  %p2565_p1 = scmp.eq.s32.totalorder %s2984_s27, 0 }
  0x14   : > { %p468_p2 = scmp.lt.s32.totalorder %s2433_s26, 3  ;;  %s2435_s30 = smov [#allocation6]  }
  0x15   : > { %s3006_s28 = scalar_select %p2565_p1, 1, 0 }
  0x16   : > { %p2570_p3 = pnand %p1804_p0, %p468_p2  ;;  %s481_s0 = sshll.u32 %s2435_s30, 4  ;;  %s482_s0 = int_to_ptr.vmem [resolvable:$true] %s481_s0 }
  0x17   : > { %s2436_s18 = smov [#allocation9]   ;;  %s2437_s20 = smov [#allocation8]  }
  0x18   : > { %s3007_s29 = scalar_select %p2570_p3, 1, 0 }
  0x19   : > { %p2067_p5 = pneg %p2570_p3  ;;  %s556_s19 = sshll.u32 %s2436_s18, 4  ;;  %s557_s19 = int_to_ptr.vmem [resolvable:$true] %s556_s19 }
  0x1a   : > { %s522_s27 = sshll.u32 %s2437_s20, 4  ;;  %s2224_s16 = scalar_lea.vmem %s482_s0, 128  ;;  %s523_s27 = int_to_ptr.vmem [resolvable:$true] %s522_s27 }
  0x1b   : > { %p2579_p6 = pnand %p2067_p5, %p2565_p1  ;;  %p2225_p8 = scmp.ne.s32.totalorder %s482_s0, %s2224_s16 }
  0x1c   : > { %p2232_p11 = scmp.lt.s32.totalorder %s482_s0, %s482_s0  ;;  %p2233_p12 = scmp.lt.s32.totalorder %s2224_s16, %s2224_s16 }
  0x1d   : > { %p2215_p7 = pneg %p2579_p6 }
  0x1e   : > { %p2234_p13 = por %p2233_p12, %p2232_p11 }
  0x1f   : > { %p2227_p9 = pnand %p2225_p8, %p2215_p7 }
  0x21   : > { %p2228_p10 = pneg %p2227_p9 }
  0x23   : > { %p2235_p0 = pnand %p2234_p13, %p2228_p10 }
  0x25   : > { %2238 = shalt.err (!%p2235_p0)
}
  0x26   : > { %s3009_s1 = sld [smem:[#allocation24_spill]]  ;;  %s2250_s20 = scalar_lea.vmem %s557_s19, 1024 }
  0x27   : > { %p2251_p2 = scmp.ne.s32.totalorder %s557_s19, %s2250_s20  ;;  %p2258_p8 = scmp.lt.s32.totalorder %s557_s19, %s557_s19 }
  0x28   : > { %p2259_p9 = scmp.lt.s32.totalorder %s2250_s20, %s2250_s20 }
  0x29   : > { %p2253_p5 = pnand %p2251_p2, %p2215_p7 }
  0x2a   : > { %p2260_p3 = por %p2259_p9, %p2258_p8 }
  0x2b   : > { %p2254_p4 = pneg %p2253_p5 }
  0x2c   : > { %2070 = dma.hbm_to_vmem [thread:$0]  (!%p2579_p6), %s3009_s1, 128, %s482_s0, [#allocation7]  }
  0x2d   : > { %p2261_p1 = pnand %p2260_p3, %p2254_p4 }
  0x2f   : > { %2264 = shalt.err (!%p2261_p1)
}
  0x30   : > { %s2438_s16 = smov 64   ;;  %s2439_s15 = smov 4  }
  0x31   : > { %s3010_s12 = sld [smem:[#allocation26_spill]]  ;;  %s2276_s0 = scalar_lea.vmem %s523_s27, 1024 }
  0x32   : > { %p2277_p10 = scmp.ne.s32.totalorder %s523_s27, %s2276_s0  ;;  %p2284_p13 = scmp.lt.s32.totalorder %s523_s27, %s523_s27 }
  0x33   : > { %p2285_p0 = scmp.lt.s32.totalorder %s2276_s0, %s2276_s0 }
  0x34   : > { %p2279_p11 = pnand %p2277_p10, %p2215_p7 }
  0x35   : > { %p2286_p3 = por %p2285_p0, %p2284_p13 }
  0x36   : > { %p2280_p12 = pneg %p2279_p11 }
  0x37   : > { %2076 = dma.hbm_to_vmem [thread:$0]  (!%p2579_p6), %s3010_s12, 1024, %s557_s19, [#allocation10], %s2438_s16, %s2438_s16, %s2439_s15  }
  0x38   : > { %p2287_p1 = pnand %p2286_p3, %p2280_p12 }
  0x3a   : > { %2290 = shalt.err (!%p2287_p1)
}
  0x3b   : > { %s3011_s8 = sld [smem:[#allocation25_spill]]  ;;  %s2440_s13 = smov [#allocation11]  }
  0x3c   : > { %s578_s19 = sshll.u32 %s2440_s13, 4  ;;  %s579_s19 = int_to_ptr.vmem [resolvable:$true] %s578_s19 }
  0x3d   : > { %s2302_s30 = scalar_lea.vmem %s579_s19, 1024  ;;  %p2310_p8 = scmp.lt.s32.totalorder %s579_s19, %s579_s19 }
  0x3e   : > { %p2303_p4 = scmp.ne.s32.totalorder %s579_s19, %s2302_s30  ;;  %p2311_p9 = scmp.lt.s32.totalorder %s2302_s30, %s2302_s30 }
  0x40   : > { %p2305_p2 = pnand %p2303_p4, %p2215_p7  ;;  %p2312_p10 = por %p2311_p9, %p2310_p8 }
  0x41   : > { %2073 = dma.hbm_to_vmem [thread:$0]  (!%p2579_p6), %s3011_s8, 1024, %s523_s27, [#allocation7], %s2438_s16, %s2438_s16, %s2439_s15  }
  0x42   : > { %p2306_p5 = pneg %p2305_p2 }
  0x44   : > { %p2313_p11 = pnand %p2312_p10, %p2306_p5 }
  0x46   : > { %2316 = shalt.err (!%p2313_p11)
}
  0x47   : > { %s3012_s14 = sld [smem:[#allocation28_spill]]  ;;  %s1803_s27 = sadd.s32 4294967294, %s2433_s26  }
  0x48   : > { %s46_s20 = sadd.s32 1, %s2429_s25  ;;  %s53_s17 = sadd.s32 1, %s2421_s23 }
  0x49   : > { %p48_p7 = scmp.ge.s32.totalorder %s46_s20, 2  ;;  %p60_p12 = scmp.ne.s32.totalorder %s2421_s23, %s2417_s22 }
  0x4a   : > { %p61_p13 = scmp.eq.s32.totalorder %s2433_s26, 0  ;;  %p66_p3 = scmp.ne.s32.totalorder %s2417_s22, %s2413_s21 }
  0x4b   : > { %s3049_s20 = smov (%p48_p7, %s46_s20), 0  ;;  %p3016_p4 = scmp.ne.s32.totalorder %s3006_s28, 0 }
  0x4c   : > { %3013 = sst [smem:[#allocation20_spill]] %s3049_s20  ;;  %p2625_p0 = por %p61_p13, %p60_p12 }
  0x4d   : > { %2079 = dma.hbm_to_vmem [thread:$0]  (!%p2579_p6), %s3012_s14, 1024, %s579_s19, [#allocation10], %s2438_s16, %s2438_s16, %s2439_s15  }
  0x4e   : > { %s50_s15 = ssub.s32 %s2429_s25, %s3049_s20  ;;  %s3015_s16 = sadd.s32 4294967295, %s2433_s26  }
  0x4f   : > { %p455_p6 = scmp.eq.s32.totalorder %s3015_s16, 1  ;;  %p51_p1 = scmp.eq.s32.totalorder %s50_s15, 0 }
  0x50   : > { %p2637_p2 = por %p3016_p4, %p66_p3  ;;  %p461_p8 = scmp.eq.s32.totalorder %s1803_s27, 1 }
  0x51   : > { %p2641_p5 = por %p455_p6, %p60_p12  ;;  %p2092_p10 = scmp.lt.s32.totalorder %s2433_s26, 2 }
  0x52   : > { %s2646_s0 = scalar_select %p51_p1, %s2421_s23, %s53_s17  }
  0x53   : > { %s3018_s30 = scalar_select %p2641_p5, 1, 0 }
  0x54   : > { %3020 = sst [smem:[#allocation22_spill]] %s2646_s0  ;;  %p2648_p9 = por %p461_p8, %p66_p3 }
  0x55   : > { %3019 = sst [smem:[#allocation21_spill]] %s3018_s30  ;;  %s598_s1 = sand.u32 1, %s2421_s23  }
  0x56   : > { %s1818_s16 = sshll.u32 %s2429_s25, 7  ;;  %s1817_s15 = sshll.u32 %s598_s1, 3 }
  0x57   : > { %s3022_s14 = sld [smem:[#allocation23_spill]]  ;;  %s602_s21 = scalar_lea.vmem [#allocation3], %s1817_s15 }
  0x58   : > { %s609_s24 = sshll.u32 %s602_s21, 4  ;;  %p2660_p11 = pnand %p2092_p10, %p2625_p0  ;;  %s610_s24 = int_to_ptr.vmem [resolvable:$true] %s609_s24 }
  0x59   : > { %s599_s27 = scalar_lea.sflag [#allocation4], %s598_s1  ;;  %s2330_s17 = scalar_lea.vmem %s610_s24, 128 }
  0x5a   : > { %p2319_p7 = pneg %p2660_p11  ;;  %p2331_p12 = scmp.ne.s32.totalorder %s610_s24, %s2330_s17 }
  0x5b   : > { %s2441_s25 = smov [#allocation3]  }
  0x5c   : > { %p2333_p13 = pnand %p2331_p12, %p2319_p7  ;;  %s2335_s0 = sshll.u32 %s2441_s25, 4  ;;  %s2336_s0 = int_to_ptr.vmem [resolvable:$false] %s2335_s0 }
  0x5d   : > { %s607_s20 = scalar_lea.hbm %s3022_s14, %s1818_s16  ;;  %s2337_s8 = scalar_lea.vmem %s2336_s0, 256 }
  0x5e   : > { %p2334_p3 = pneg %p2333_p13  ;;  %p2338_p6 = scmp.lt.s32.totalorder %s610_s24, %s2336_s0 }
  0x5f   : > { %p2339_p1 = scmp.lt.s32.totalorder %s2337_s8, %s2330_s17 }
  0x61   : > { %p2340_p4 = por %p2339_p1, %p2338_p6 }
  0x63   : > { %p2341_p0 = pnand %p2340_p4, %p2334_p3 }
  0x65   : > { %2344 = shalt.err (!%p2341_p0)
}
  0x66   : > { %2083 = dma.hbm_to_vmem [thread:$0]  (!%p2660_p11), %s607_s20, 128, %s610_s24, %s599_s27  }
  0x67   : > { %p3024_p8 = scmp.ne.s32.totalorder %s3007_s29, 0 }
  0x68   : > { %s2671_s1 = sand.u32 (!%p3024_p8), 1, %s2417_s22  }
  0x69   : > { %618 = sbr.rel (%p3024_p8) target bundleno = 1335 (0x537), region = 84  ;;  %s1820_s12 = sshll.u32 (!%p3024_p8), %s2671_s1, 3 }
  0x6a   : > { %s621_s14 = scalar_lea.sflag (!%p3024_p8), [#allocation4], %s2671_s1  ;;  %s2677_s21 = scalar_lea.vmem (!%p3024_p8), [#allocation3], %s1820_s12 }
  0x6e   : > { %2396 = dma.done.wait (%p2637_p2), %s621_s14, 128  }
  0x6f   : > { %2398 = vsyncadd (%p2637_p2), %s621_s14, 4294967168  ;;  %p3025_p10 = scmp.ne.s32.totalorder %s3006_s28, 0 }
  0x71   : > { %2400 = dma.done.wait (%p3025_p10), [#allocation7], 1152  }
  0x72   : > { %2402 = vsyncadd (%p3025_p10), [#allocation7], 4294966144 }
  0x73   : > { %2404 = dma.done.wait (%p3025_p10), [#allocation10], 2048  }
  0x74   : > { %2406 = vsyncadd (%p3025_p10), [#allocation10], 4294965248  ;;  %v2442_v0 = vmov 0.0   ;;  %vm2994_vm0 = vmmov 0   ;;  %v2444_v1 = vmov 0   ;;  %v2157_v2 = vld [vmem:[%s2973_s6 + $0x38] sm:$0xff]   ;;  %v1083_v48 = vlaneseq }
  0x75   : > { %1934 = vmatprep.subr.bf16.mxu0 %v2442_v0  ;;  %1954 = vmatprep.subr.bf16.mxu1 %v2442_v0  ;;  %v2158_v3 = vld [vmem:[%s2974_s7 + $0x38] sm:$0xff]   ;;  %v2159_v4 = vld [vmem:[%s2973_s6 + $0x30] sm:$0xff]   ;;  %v2161_v6 = vld [vmem:[%s2973_s6 + $0x28] sm:$0xff]   ;;  %s3035_s0 = sld [smem:[#allocation18_spill]]  ;;  %s713_s25 = scalar_lea.vmem [#allocation12], %s1820_s12 }
  0x76   : > { %1950 = vmatprep.mubr.msk.bf16.mxu0 %vm2994_vm0, %v2442_v0  ;;  %1970 = vmatprep.mubr.msk.bf16.mxu1 %vm2994_vm0, %v2442_v0  ;;  %v2160_v5 = vld [vmem:[%s2974_s7 + $0x30] sm:$0xff]   ;;  %v2162_v7 = vld [vmem:[%s2974_s7 + $0x28] sm:$0xff]   ;;  %v2163_v8 = vld [vmem:[%s2973_s6 + $0x20] sm:$0xff]   ;;  %v2821_v49 = vand.u32 127, %v1083_v48  ;;  %s3036_s15 = sld [smem:[#allocation27_spill]]  ;;  %s1590_s28 = sshll.u32 %s713_s25, 4  ;;  %s2921_s28 = int_to_ptr.vmem [resolvable:$true] %s1590_s28 }
  0x77   : > { %2156 = vset.pattern.permute.xlu1 %v2444_v1  ;;  %2155 = vset.pattern.permute.xlu0 %v2444_v1  ;;  %v2164_v9 = vld [vmem:[%s2974_s7 + $0x20] sm:$0xff]   ;;  %v2165_v10 = vld [vmem:[%s2973_s6 + $0x18] sm:$0xff]   ;;  %v2167_v14 = vld [vmem:[%s2973_s6 + $0x10] sm:$0xff]   ;;  %s3038_s14 = sld [smem:[#allocation29_spill]]  ;;  %s1577_s30 = scalar_lea.sflag [#allocation5], %s2671_s1 }
  0x78   : > { %1935 = vmatpush3.bf16.msra.mxu0 %v2157_v2  ;;  %1955 = vmatpush3.bf16.msra.mxu1 %v2158_v3  ;;  %v2166_v11 = vld [vmem:[%s2974_s7 + $0x18] sm:$0xff]   ;;  %v1105_v12 = vld [vmem:[%s2972_s5] sm:$0xff]  ;;  %v1106_v15 = vld [vmem:[%s2972_s5 + $0x8] sm:$0xff]  ;;  %s3039_s13 = sld [smem:[#allocation30_spill]]  ;;  %s2445_s12 = smov [#allocation12]  }
  0x79   : > { %1936 = vmatprep.subr.bf16.mxu0 %v2442_v0  ;;  %1956 = vmatprep.subr.bf16.mxu1 %v2442_v0  ;;  %v1085_v13 = vld [vmem:[%s2971_s4] sm:$0xff]  ;;  %v2168_v16 = vld [vmem:[%s2974_s7 + $0x10] sm:$0xff]   ;;  %v1086_v17 = vld [vmem:[%s2971_s4 + $0x8] sm:$0xff]  ;;  %s2349_s16 = sshll.u32 %s2445_s12, 4  ;;  %s2350_s16 = int_to_ptr.vmem [resolvable:$false] %s2349_s16 }
  0x7a   : > { %1110 = vperm.xlu1 %2156, %v1105_v12   ;;  %1090 = vperm.xlu0 %2155, %v1085_v13   ;;  %v2169_v18 = vld [vmem:[%s2973_s6 + $0x8] sm:$0xff]   ;;  %v745_v21 = vld [vmem:[#allocation6] sm:$0xff]  ;;  %v1088_v22 = vld [vmem:[%s2971_s4 + $0x18] sm:$0xff]  ;;  %p2352_p12 = scmp.lt.s32.totalorder %s2921_s28, %s2350_s16 }
  0x7b   : > { %v744_v19 = vld [vmem:[%s2677_s21] sm:$0xff]  ;;  %v1087_v23 = vld [vmem:[%s2971_s4 + $0x10] sm:$0xff]  ;;  %v1108_v25 = vld [vmem:[%s2972_s5 + $0x18] sm:$0xff]  ;;  %s1880_s24 = sshll.u32 %s3035_s0, 7  ;;  %s2345_s0 = scalar_lea.vmem %s2921_s28, 128 }
  0x7c   : > { %1937 = vmatpush3.bf16.msra.mxu0 %v2159_v4  ;;  %1957 = vmatpush3.bf16.msra.mxu1 %v2160_v5  ;;  %v2170_v20 = vld [vmem:[%s2974_s7 + $0x8] sm:$0xff]   ;;  %v2171_v24 = vld [vmem:[%s2973_s6] sm:$0xff]   ;;  %v746_v27 = vadd.f32 %v745_v21, %v744_v19  ;;  %v1107_v28 = vld [vmem:[%s2972_s5 + $0x10] sm:$0xff]  ;;  %p2346_p2 = scmp.ne.s32.totalorder %s2921_s28, %s2345_s0  ;;  %s2351_s21 = scalar_lea.vmem %s2350_s16, 256 }
  0x7d   : > { %1938 = vmatprep.subr.bf16.mxu0 %v2442_v0  ;;  %1958 = vmatprep.subr.bf16.mxu1 %v2442_v0  ;;  %v2172_v26 = vld [vmem:[%s2974_s7] sm:$0xff]   ;;  %v1186_v29 = vld [vmem:[%s2969_s2 + $0x8] sm:$0xff]  ;;  %v1188_v34 = vld [vmem:[%s2969_s2 + $0x18] sm:$0xff]  ;;  %p2353_p13 = scmp.lt.s32.totalorder %s2351_s21, %s2345_s0 }
  0x7e   : > { %1113 = vperm.xlu1 %2156, %v1106_v15   ;;  %1093 = vperm.xlu0 %2155, %v1086_v17   ;;  %v749_v30 = vpack.c.bf16 %v746_v27, %v746_v27  ;;  %v1185_v31 = vld [vmem:[%s2969_s2] sm:$0xff]  ;;  %v1206_v32 = vld [vmem:[%s2970_s3 + $0x8] sm:$0xff]  ;;  %v1187_v35 = vld [vmem:[%s2969_s2 + $0x10] sm:$0xff]  ;;  %s2919_s19 = scalar_lea.hbm %s3039_s13, %s1880_s24  ;;  %p2347_p11 = pnand %p2346_p2, %p2641_p5 }
  0x7f   : > { %v1205_v33 = vld [vmem:[%s2970_s3] sm:$0xff]  ;;  %v1208_v36 = vld [vmem:[%s2970_s3 + $0x18] sm:$0xff]  ;;  %v1207_v37 = vld [vmem:[%s2970_s3 + $0x10] sm:$0xff]  ;;  %p2354_p3 = por %p2353_p13, %p2352_p12 }
  0x80   : > { %1939 = vmatpush3.bf16.msra.mxu0 %v2161_v6  ;;  %1959 = vmatpush3.bf16.msra.mxu1 %v2162_v7  ;;  %v2173_v38 = vld [vmem:[#allocation8 + $0x38] sm:$0xff]   ;;  %v2174_v39 = vld [vmem:[#allocation8 + $0x30] sm:$0xff]   ;;  %v2175_v40 = vld [vmem:[#allocation8 + $0x28] sm:$0xff]   ;;  %p2348_p7 = pneg %p2347_p11 }
  0x81   : > { %1940 = vmatprep.subr.bf16.mxu0 %v2442_v0  ;;  %1960 = vmatprep.subr.bf16.mxu1 %v2442_v0  ;;  %v2176_v41 = vld [vmem:[#allocation8 + $0x20] sm:$0xff]   ;;  %v2177_v42 = vld [vmem:[#allocation8 + $0x18] sm:$0xff]   ;;  %v2178_v43 = vld [vmem:[#allocation8 + $0x10] sm:$0xff]  }
  0x82   : > { %1099 = vperm.xlu1 %2156, %v1088_v22   ;;  %1096 = vperm.xlu0 %2155, %v1087_v23   ;;  %v2179_v44 = vld [vmem:[#allocation8 + $0x8] sm:$0xff]   ;;  %v2180_v45 = vld [vmem:[#allocation8] sm:$0xff]   ;;  %p2355_p6 = pnand %p2354_p3, %p2348_p7 }
  0x83   : > { %v1826_v52 = vld [vmem:[%s2976_s9] ss:$0 sm:$0xff] }
  0x84   : > { %1941 = vmatpush3.bf16.msra.mxu0 %v2163_v8  ;;  %1961 = vmatpush3.bf16.msra.mxu1 %v2164_v9  ;;  %v1835_v54 = vld [vmem:[%s2977_s10] ss:$0 sm:$0xff] }
  0x85   : > { %1942 = vmatprep.subr.bf16.mxu0 %v2442_v0  ;;  %1962 = vmatprep.subr.bf16.mxu1 %v2442_v0  ;;  %v1861_v55 = vld [vmem:[%s3036_s15] ss:$0 sm:$0xff] }
  0x86   : > { %1119 = vperm.xlu1 %2156, %v1108_v25   ;;  %1116 = vperm.xlu0 %2155, %v1107_v28  }
  0x88   : > { %1943 = vmatpush3.bf16.msra.mxu0 %v2165_v10  ;;  %1963 = vmatpush3.bf16.msra.mxu1 %v2166_v11 }
  0x89   : > { %1944 = vmatprep.subr.bf16.mxu0 %v2442_v0  ;;  %1964 = vmatprep.subr.bf16.mxu1 %v2442_v0 }
  0x8a   : > { %1193 = vperm.xlu1 %2156, %v1186_v29   ;;  %1190 = vperm.xlu0 %2155, %v1185_v31   ;;  %v1844_v31 = vld [vmem:[%s2978_s11] ss:$0 sm:$0xff] }
  0x8c   : > { %1945 = vmatpush3.bf16.msra.mxu0 %v2167_v14  ;;  %1965 = vmatpush3.bf16.msra.mxu1 %v2168_v16 }
  0x8d   : > { %1946 = vmatprep.subr.bf16.mxu0 %v2442_v0  ;;  %1966 = vmatprep.subr.bf16.mxu1 %v2442_v0 }
  0x8e   : > { %1213 = vperm.xlu1 %2156, %v1206_v32   ;;  %1210 = vperm.xlu0 %2155, %v1205_v33  }
  0x90   : > { %1947 = vmatpush3.bf16.msra.mxu0 %v2169_v18  ;;  %1967 = vmatpush3.bf16.msra.mxu1 %v2170_v20 }
  0x91   : > { %1948 = vmatprep.subr.bf16.mxu0 %v2442_v0  ;;  %1968 = vmatprep.subr.bf16.mxu1 %v2442_v0 }
  0x92   : > { %1199 = vperm.xlu1 %2156, %v1188_v34   ;;  %1196 = vperm.xlu0 %2155, %v1187_v35  }
  0x94   : > { %1949 = vmatpush3.bf16.msra.mxu0 %v2171_v24  ;;  %1969 = vmatpush3.bf16.msra.mxu1 %v2172_v26 }
  0x95   : > { %1974 = vmatprep.subr.bf16.mxu0 %v2442_v0 }
  0x96   : > { %1219 = vperm.xlu1 %2156, %v1208_v36   ;;  %1216 = vperm.xlu0 %2155, %v1207_v37  }
  0x97   : > { %1951 = vmatmul.mubr.bf16.vlgmr.msra.gmra.mxu0 %v749_v30  ;;  %1971 = vmatmul.mubr.bf16.vlgmr.msra.gmra.mxu1 %v749_v30 }
  0x98   : > { %1990 = vmatprep.mubr.msk.bf16.mxu0 %vm2994_vm0, %v2442_v0  ;;  %1975 = vmatpush3.bf16.msra.mxu0 %v2173_v38 }
  0x99   : > { %1976 = vmatprep.subr.bf16.mxu0 %v2442_v0 }
  0x9c   : > { %1977 = vmatpush3.bf16.msra.mxu0 %v2174_v39 }
  0x9d   : > { %1978 = vmatprep.subr.bf16.mxu0 %v2442_v0 }
  0xa0   : > { %1979 = vmatpush3.bf16.msra.mxu0 %v2175_v40 }
  0xa1   : > { %1980 = vmatprep.subr.bf16.mxu0 %v2442_v0 }
  0xa4   : > { %1981 = vmatpush3.bf16.msra.mxu0 %v2176_v41 }
  0xa5   : > { %1982 = vmatprep.subr.bf16.mxu0 %v2442_v0 }
  0xa8   : > { %1983 = vmatpush3.bf16.msra.mxu0 %v2177_v42 }
  0xa9   : > { %1984 = vmatprep.subr.bf16.mxu0 %v2442_v0 }
  0xac   : > { %1985 = vmatpush3.bf16.msra.mxu0 %v2178_v43 }
  0xad   : > { %1986 = vmatprep.subr.bf16.mxu0 %v2442_v0 }
  0xb0   : > { %1987 = vmatpush3.bf16.msra.mxu0 %v2179_v44 }
  0xb1   : > { %1988 = vmatprep.subr.bf16.mxu0 %v2442_v0 }
  0xb4   : > { %1989 = vmatpush3.bf16.msra.mxu0 %v2180_v45 }
  0xb5   : > { %2026 = vmatprep.subr.bf16.mxu0 %v2442_v0 }
  0xb7   : > { %1991 = vmatmul.mubr.bf16.vlgmr.msra.gmra.mxu0 %v749_v30 }
  0xb8   : > { %2042 = vmatprep.mubr.msk.bf16.mxu0 %vm2994_vm0, %v2442_v0 }
  0xf5   : > { %v1111_v46 = vpop.permute.xlu1 %1110  ;;  %v1091_v47 = vpop.permute.xlu0 %1090 }
  0xf6   : > { %vm1121_vm1 = vcmp.lt.s32.totalorder %v2821_v49, %v1111_v46  ;;  %vm1101_vm2 = vcmp.ge.s32.totalorder %v2821_v49, %v1091_v47 }
  0xf7   : > { %vm2833_vm5 = vmand %vm1101_vm2, %vm1121_vm1 }
  0xf9   : > { %v1114_v50 = vpop.permute.xlu1 %1113  ;;  %v1094_v51 = vpop.permute.xlu0 %1093 }
  0xfa   : > { %vm1122_vm3 = vcmp.lt.s32.totalorder %v2821_v49, %v1114_v50  ;;  %vm1102_vm4 = vcmp.ge.s32.totalorder %v2821_v49, %v1094_v51 }
  0xfb   : > { %vm2837_vm6 = vmand %vm1102_vm4, %vm1122_vm3 }
  0xfc   : > { %vm1853_vm7 = vmpackc.low %vm2837_vm6, %vm2833_vm5 }
  0xfd   : > { %v1100_v53 = vpop.permute.xlu1 %1099  ;;  %v1097_v56 = vpop.permute.xlu0 %1096 }
  0xfe   : > { %vm1104_vm8 = vcmp.ge.s32.totalorder %v2821_v49, %v1100_v53  ;;  %vm1103_vm10 = vcmp.ge.s32.totalorder %v2821_v49, %v1097_v56 }
 0x101   : > { %v1120_v4 = vpop.permute.xlu1 %1119  ;;  %v1117_v6 = vpop.permute.xlu0 %1116 }
 0x102   : > { %vm1124_vm9 = vcmp.lt.s32.totalorder %v2821_v49, %v1120_v4  ;;  %vm1123_vm11 = vcmp.lt.s32.totalorder %v2821_v49, %v1117_v6  ;;  %v2185_v4 = vld [vmem:[#allocation9 + $0x18] sm:$0xff]   ;;  %v2187_v6 = vld [vmem:[#allocation9 + $0x8] sm:$0xff]  }
 0x103   : > { %vm2849_vm12 = vmand %vm1104_vm8, %vm1124_vm9  ;;  %vm1233_vm9 = vcmask 64512  }
 0x104   : > { %vm2853_vm13 = vmand %vm1103_vm10, %vm1123_vm11 }
 0x105   : > { %vm1856_vm14 = vmpackc.low %vm2849_vm12, %vm2853_vm13  ;;  %v1191_v11 = vpop.permute.xlu0 %1190  ;;  %v1194_v12 = vpop.permute.xlu1 %1193 }
 0x106   : > { %vm1201_vm15 = vcmp.ge.s32.totalorder %v2821_v49, %v1191_v11  ;;  %v2190_v11 = vld [vmem:[#allocation11 + $0x30] sm:$0xff]  }
 0x109   : > { %v1211_v13 = vpop.permute.xlu0 %1210  ;;  %v1214_v14 = vpop.permute.xlu1 %1213 }
 0x10a   : > { %vm1221_vm1 = vcmp.le.s32.totalorder %v2821_v49, %v1211_v13  ;;  %vm1222_vm8 = vcmp.le.s32.totalorder %v2821_v49, %v1214_v14  ;;  %v2192_v13 = vld [vmem:[#allocation11 + $0x20] sm:$0xff]   ;;  %v2193_v14 = vld [vmem:[#allocation11 + $0x18] sm:$0xff]  }
 0x10b   : > { %vm1225_vm4 = vmand %vm1201_vm15, %vm1221_vm1  ;;  %vm1279_vm1 = vcmask 1043456  }
 0x10d   : > { %v1197_v15 = vpop.permute.xlu0 %1196  ;;  %v1200_v16 = vpop.permute.xlu1 %1199 }
 0x10e   : > { %vm1203_vm2 = vcmp.ge.s32.totalorder %v2821_v49, %v1197_v15  ;;  %vm1204_vm11 = vcmp.ge.s32.totalorder %v2821_v49, %v1200_v16  ;;  %v2194_v15 = vld [vmem:[#allocation11 + $0x10] sm:$0xff]   ;;  %v2195_v16 = vld [vmem:[#allocation11 + $0x8] sm:$0xff]  }
 0x111   : > { %v1217_v17 = vpop.permute.xlu0 %1216  ;;  %v1220_v19 = vpop.permute.xlu1 %1219 }
 0x112   : > { %vm1223_vm3 = vcmp.le.s32.totalorder %v2821_v49, %v1217_v17 }
 0x113   : > { %vm1227_vm10 = vmand %vm1203_vm2, %vm1223_vm3 }
 0x157   : > { %v855_v57 = vpop.f32.mrf.mxu0  ;;  %v966_v60 = vpop.f32.mrf.mxu1 }
 0x158   : > { %v856_v59 = vadd.f32 %v1826_v52, %v855_v57  ;;  %v967_v61 = vadd.f32 %v1835_v54, %v966_v60 }
 0x159   : > { %v1952_v62 = vpop.f32.mrf.mxu0  ;;  %v1972_v1 = vpop.f32.mrf.mxu1 }
 0x15a   : > { %v1854_v63 = vpack.c.bf16 %v856_v59, %v856_v59  ;;  %v1135_v2 = vpack.c.bf16 %v967_v61, %v967_v61  ;;  %v2182_v1 = vld [vmem:[#allocation9 + $0x30] sm:$0xff]  }
 0x15b   : > { %v858_v3 = vpop.f32.mrf.mxu0  ;;  %v969_v5 = vpop.f32.mrf.mxu1 }
 0x15c   : > { %1996 = vmatprep.mubr.msk.bf16.mxu1 %vm1853_vm7, %v1854_v63  ;;  %1994 = vmatprep.subr.bf16.mxu1 %v1135_v2  ;;  %vm1202_vm7 = vcmp.ge.s32.totalorder %v2821_v49, %v1194_v12  ;;  %v2184_v3 = vld [vmem:[#allocation9 + $0x20] sm:$0xff]   ;;  %v2186_v5 = vld [vmem:[#allocation9 + $0x10] sm:$0xff]   ;;  %v2191_v12 = vld [vmem:[#allocation11 + $0x28] sm:$0xff]  }
 0x15d   : > { %v1953_v7 = vpop.f32.mrf.mxu0  ;;  %v1973_v8 = vpop.f32.mrf.mxu1  ;;  %1995 = vmatpush3.bf16.xpose.msra.mxu1 %v1135_v2  ;;  %vm1226_vm0 = vmand %vm1202_vm7, %vm1222_vm8  ;;  %v2183_v2 = vld [vmem:[#allocation9 + $0x28] sm:$0xff]  }
 0x15e   : > { %v2188_v7 = vld [vmem:[#allocation9] sm:$0xff]   ;;  %v2189_v8 = vld [vmem:[#allocation11 + $0x38] sm:$0xff]  }
 0x15f   : > { %2027 = vmatpush3.bf16.msra.mxu0 %v2189_v8 }
 0x160   : > { %2028 = vmatprep.subr.bf16.mxu0 %v2442_v0 }
 0x163   : > { %2029 = vmatpush3.bf16.msra.mxu0 %v2190_v11 }
 0x164   : > { %1997 = vmatmul.mubr.msk.bf16.vlgmr.msra.gmra.mxu1 %vm1856_vm14, %v1854_v63  ;;  %vm1224_vm14 = vcmp.le.s32.totalorder %v2821_v49, %v1220_v19  ;;  %v2181_v63 = vld [vmem:[#allocation9 + $0x38] sm:$0xff]   ;;  %2030 = vmatprep.subr.bf16.mxu0 %v2442_v0 }
 0x165   : > { %vm1228_vm15 = vmand %vm1204_vm11, %vm1224_vm14 }
 0x167   : > { %2031 = vmatpush3.bf16.msra.mxu0 %v2191_v12 }
 0x168   : > { %2032 = vmatprep.subr.bf16.mxu0 %v2442_v0 }
 0x16b   : > { %2033 = vmatpush3.bf16.msra.mxu0 %v2192_v13 }
 0x16c   : > { %2034 = vmatprep.subr.bf16.mxu0 %v2442_v0 }
 0x16f   : > { %2035 = vmatpush3.bf16.msra.mxu0 %v2193_v14 }
 0x170   : > { %2036 = vmatprep.subr.bf16.mxu0 %v2442_v0 }
 0x173   : > { %2037 = vmatpush3.bf16.msra.mxu0 %v2194_v15 }
 0x174   : > { %2038 = vmatprep.subr.bf16.mxu0 %v2442_v0 }
 0x177   : > { %v1077_v32 = vpop.f32.mrf.mxu0  ;;  %2039 = vmatpush3.bf16.msra.mxu0 %v2195_v16 }
 0x178   : > { %v1078_v33 = vadd.f32 %v1844_v31, %v1077_v32  ;;  %2040 = vmatprep.subr.bf16.mxu0 %v2442_v0 }
 0x179   : > { %v1992_v34 = vpop.f32.mrf.mxu0 }
 0x17a   : > { %v1272_v35 = vpack.c.bf16 %v1078_v33, %v1078_v33 }
 0x17b   : > { %v1080_v36 = vpop.f32.mrf.mxu0 }
 0x17c   : > { %v1281_v37 = vsel %vm1279_vm1, %v1272_v35, 0  ;;  %2046 = vmatprep.subr.msk.bf16.mxu1 %vm1279_vm1, %v1272_v35 }
 0x17d   : > { %v1993_v38 = vpop.f32.mrf.mxu0  ;;  %2001 = vmatpush3.bf16.msra.mxu1 %v1281_v37 }
 0x17e   : > { %2006 = vmatprep.subr.bf16.mxu1 %v2442_v0 }
 0x224   : > { %v1998_v18 = vpop.f32.mrf.mxu1 }
 0x225   : > { %v1231_v24 = vsel %vm1227_vm10, %v1998_v18, -1e+30 }
 0x226   : > { %v1170_v20 = vpop.f32.mrf.mxu1  ;;  %v1240_v27 = vsel %vm1233_vm9, %v1231_v24, -inf }
 0x227   : > { %v1229_v21 = vsel %vm1225_vm4, %v1170_v20, -1e+30 }
 0x228   : > { %v1999_v22 = vpop.f32.mrf.mxu1  ;;  %v1234_v23 = vsel %vm1233_vm9, %v1229_v21, -inf }
 0x229   : > { %1235 = vmax.xlane.f32.xlu0 %v1234_v23  ;;  %v1232_v29 = vsel %vm1228_vm15, %v1999_v22, -1e+30 }
 0x22a   : > { %v1173_v25 = vpop.f32.mrf.mxu1  ;;  %v1243_v30 = vsel %vm1233_vm9, %v1232_v29, -inf }
 0x22b   : > { %v1230_v26 = vsel %vm1226_vm0, %v1173_v25, -1e+30  ;;  %vm3034_vm0 = vmmov 0  }
 0x22c   : > { %v1237_v28 = vsel %vm1233_vm9, %v1230_v26, -inf }
 0x22d   : > { %1241 = vmax.xlane.f32.xlu0 %v1240_v27  ;;  %1238 = vmax.xlane.f32.xlu1 %v1237_v28 }
 0x231   : > { %1244 = vmax.xlane.f32.xlu0 %v1243_v30 }
 0x2b2   : > { %v1236_v39 = vpop.xlane.xlu0 %1235 }
 0x2b3   : > { %v1246_v40 = vsub.f32 %v1229_v21, %v1236_v39 }
 0x2b5   : > { %v1250_v41 = vmul.f32 1.442695, %v1246_v40  ;;  %v2196_v40 = vld [vmem:[#allocation11] sm:$0xff]  }
 0x2b6   : > { %v1242_v42 = vpop.xlane.xlu0 %1241  ;;  %v1239_v43 = vpop.xlane.xlu1 %1238  ;;  %2041 = vmatpush3.bf16.msra.mxu0 %v2196_v40 }
 0x2b7   : > { %2197 = vpow2.f32 %v1250_v41  ;;  %v1248_v44 = vsub.f32 %v1231_v24, %v1242_v42  ;;  %v1247_v45 = vsub.f32 %v1230_v26, %v1239_v43 }
 0x2b9   : > { %v1254_v46 = vmul.f32 1.442695, %v1248_v44  ;;  %v1252_v47 = vmul.f32 1.442695, %v1247_v45  ;;  %v1870_v44 = vld [vmem:[%s3038_s14] ss:$0 sm:$0xff] }
 0x2ba   : > { %v1245_v48 = vpop.xlane.xlu0 %1244 }
 0x2bb   : > { %2199 = vpow2.f32 %v1254_v46  ;;  %v1249_v49 = vsub.f32 %v1232_v29, %v1245_v48 }
 0x2bc   : > { %2201 = vpow2.f32 %v1252_v47 }
 0x2bd   : > { %v1256_v50 = vmul.f32 1.442695, %v1249_v49 }
 0x2bf   : > { %2203 = vpow2.f32 %v1256_v50 }
 0x2c4   : > { %v2198_v51 = vpop.eup %2197 }
 0x2c5   : > { %v1258_v52 = vsel %vm1233_vm9, %v2198_v51, 0.0 }
 0x2c6   : > { %1259 = vadd.xlane.f32.xlu1 %v1258_v52 }
 0x2c8   : > { %v2200_v53 = vpop.eup %2199 }
 0x2c9   : > { %v2202_v54 = vpop.eup %2201  ;;  %v1264_v56 = vsel %vm1233_vm9, %v2200_v53, 0.0 }
 0x2ca   : > { %1265 = vadd.xlane.f32.xlu1 %v1264_v56  ;;  %v1261_v57 = vsel %vm1233_vm9, %v2202_v54, 0.0  ;;  %v1270_v59 = vpack.c.bf16 %v2202_v54, %v2198_v51 }
 0x2cb   : > { %1262 = vadd.xlane.f32.xlu0 %v1261_v57 }
 0x2cc   : > { %v2204_v60 = vpop.eup %2203  ;;  %2002 = vmatprep.mubr.msk.bf16.mxu1 %vm1233_vm9, %v1270_v59 }
 0x2cd   : > { %v1267_v61 = vsel %vm1233_vm9, %v2204_v60, 0.0  ;;  %v1271_v62 = vpack.c.bf16 %v2204_v60, %v2200_v53 }
 0x2cf   : > { %1268 = vadd.xlane.f32.xlu0 %v1267_v61  ;;  %2003 = vmatmul.mubr.msk.bf16.vlgmr.msra.gmra.mxu1 %vm1233_vm9, %v1271_v62 }
 0x2d0   : > { %2022 = vmatprep.mubr.msk.bf16.mxu1 %vm3034_vm0, %v2442_v0  ;;  %2007 = vmatpush3.bf16.msra.mxu1 %v2181_v63 }
 0x2d1   : > { %2008 = vmatprep.subr.bf16.mxu1 %v2442_v0 }
 0x2d4   : > { %2009 = vmatpush3.bf16.msra.mxu1 %v2182_v1 }
 0x2d5   : > { %2010 = vmatprep.subr.bf16.mxu1 %v2442_v0 }
 0x2d8   : > { %2011 = vmatpush3.bf16.msra.mxu1 %v2183_v2 }
 0x2d9   : > { %2012 = vmatprep.subr.bf16.mxu1 %v2442_v0 }
 0x2dc   : > { %2013 = vmatpush3.bf16.msra.mxu1 %v2184_v3 }
 0x2dd   : > { %2014 = vmatprep.subr.bf16.mxu1 %v2442_v0 }
 0x2e0   : > { %2015 = vmatpush3.bf16.msra.mxu1 %v2185_v4 }
 0x2e1   : > { %2016 = vmatprep.subr.bf16.mxu1 %v2442_v0 }
 0x2e4   : > { %2017 = vmatpush3.bf16.msra.mxu1 %v2186_v5 }
 0x2e5   : > { %2018 = vmatprep.subr.bf16.mxu1 %v2442_v0 }
 0x2e8   : > { %2019 = vmatpush3.bf16.msra.mxu1 %v2187_v6 }
 0x2e9   : > { %2020 = vmatprep.subr.bf16.mxu1 %v2442_v0 }
 0x2ec   : > { %2021 = vmatpush3.bf16.msra.mxu1 %v2188_v7 }
 0x34f   : > { %v1260_v17 = vpop.xlane.xlu1 %1259 }
 0x350   : > { %2205 = vrcp.f32 %v1260_v17 }
 0x353   : > { %v1266_v19 = vpop.xlane.xlu1 %1265 }
 0x354   : > { %v1263_v18 = vpop.xlane.xlu0 %1262  ;;  %2207 = vrcp.f32 %v1266_v19 }
 0x355   : > { %2209 = vrcp.f32 %v1263_v18 }
 0x358   : > { %v1269_v20 = vpop.xlane.xlu0 %1268 }
 0x359   : > { %2211 = vrcp.f32 %v1269_v20 }
 0x35d   : > { %v2206_v23 = vpop.eup %2205 }
 0x361   : > { %v2208_v25 = vpop.eup %2207 }
 0x362   : > { %v2210_v27 = vpop.eup %2209 }
 0x366   : > { %v2212_v31 = vpop.eup %2211 }
 0x38f   : > { %v2004_v21 = vpop.f32.mrf.mxu1 }
 0x390   : > { %v1338_v29 = vmul.f32 %v2208_v25, %v2004_v21 }
 0x391   : > { %v1317_v22 = vpop.f32.mrf.mxu1 }
 0x392   : > { %v1336_v26 = vmul.f32 %v2206_v23, %v1317_v22  ;;  %v1342_v35 = vsel %vm2853_vm13, %v1338_v29, 0.0 }
 0x393   : > { %v2005_v24 = vpop.f32.mrf.mxu1 }
 0x394   : > { %v1340_v0 = vsel %vm2833_vm5, %v1336_v26, 0.0  ;;  %v1339_v32 = vmul.f32 %v2212_v31, %v2005_v24 }
 0x395   : > { %v1320_v28 = vpop.f32.mrf.mxu1 }
 0x396   : > { %v1337_v30 = vmul.f32 %v2210_v27, %v1320_v28  ;;  %v1343_v37 = vsel %vm2849_vm12, %v1339_v32, 0.0 }
 0x398   : > { %v1341_v33 = vsel %vm2837_vm6, %v1337_v30, 0.0 }
 0x399   : > { %v1344_v34 = vadd.f32 %v1341_v33, %v1340_v0 }
 0x39b   : > { %v1345_v36 = vadd.f32 %v1344_v34, %v1342_v35 }
 0x39d   : > { %v1346_v38 = vadd.f32 %v1345_v36, %v1343_v37 }
 0x39f   : > { %v1347_v39 = vpack.c.bf16 %v1346_v38, %v1346_v38 }
 0x3a1   : > { %2023 = vmatmul.mubr.bf16.vlgmr.msra.gmra.mxu1 %v1347_v39 }
 0x461   : > { %v1453_v58 = vpop.f32.mrf.mxu1 }
 0x462   : > { %v1454_v41 = vadd.f32 %v1861_v55, %v1453_v58 }
 0x463   : > { %v2024_v42 = vpop.f32.mrf.mxu1 }
 0x464   : > { %v1459_v10 = vpack.c.bf16 %v1454_v41, %v1454_v41 }
 0x465   : > { %v1456_v43 = vpop.f32.mrf.mxu1 }
 0x466   : > { %2043 = vmatmul.mubr.bf16.vlgmr.msra.gmra.mxu0 %v1459_v10 }
 0x467   : > { %v2025_v9 = vpop.f32.mrf.mxu1 }
 0x526   : > { %v1565_v45 = vpop.f32.mrf.mxu0 }
 0x527   : > { %v1566_v46 = vadd.f32 %v1870_v44, %v1565_v45 }
 0x528   : > { %v2044_v47 = vpop.f32.mrf.mxu0 }
 0x529   : > { %1575 = vst [vmem:[%s713_s25] sm:$0xff] %v1566_v46 }
 0x52a   : > { %v1568_v48 = vpop.f32.mrf.mxu0 }
 0x52b   : > { %2358 = shalt.err (!%p2355_p6)
}
 0x52c   : > { %s2359_s15 = scalar_lea.hbm %s2919_s19, 128  ;;  %s2363_s8 = scalar_lea.hbm %s3039_s13, 256 }
 0x52d   : > { %p2360_p1 = scmp.ne.s32.totalorder %s2919_s19, %s2359_s15  ;;  %p2364_p8 = scmp.lt.s32.totalorder %s2919_s19, %s3039_s13 }
 0x52e   : > { %p2365_p10 = scmp.lt.s32.totalorder %s2363_s8, %s2359_s15 }
 0x52f   : > { %p2361_p4 = pnand %p2360_p1, %p2641_p5 }
 0x530   : > { %p2366_p2 = por %p2365_p10, %p2364_p8 }
 0x531   : > { %p2362_p0 = pneg %p2361_p4 }
 0x533   : > { %p2367_p11 = pnand %p2366_p2, %p2362_p0 }
 0x535   : > { %2370 = shalt.err (!%p2367_p11)
}
 0x536   : > { %2065 = dma.vmem_to_hbm [thread:$0]  (%p2641_p5), %s2921_s28, 128, %s2919_s19, %s1577_s30   ;;  %v2045_v49 = vpop.f32.mrf.mxu0 }
 0x537 PF: > { %s3040_s25 = sld [smem:[#allocation17_spill]]  ;;  %p3041_p7 = scmp.ge.s32.totalorder %s2433_s26, 2 }
 0x539   : > { %p2085_p12 = pnand %p3041_p7, %p2648_p9 }
 0x53b   : > { %p2086_p13 = pneg %p2085_p12 }
 0x53d   : > { %s1602_s29 = sand.u32 1, %s3040_s25  }
 0x53e   : > { %s1603_s20 = scalar_lea.sflag [#allocation5], %s1602_s29 }
 0x53f   : > { %2408 = dma.done.wait (%p2086_p13), %s1603_s20, 128  }
 0x540   : > { %2410 = vsyncadd (%p2086_p13), %s1603_s20, 4294967168  ;;  %s34_s26 = sadd.s32 1, %s2433_s26   ;;  %s3042_s27 = sld [smem:[#allocation22_spill]] }
 0x541   : > { %p31_p3 = scmp.ge.s32.totalorder %s34_s26, 4   ;;  %s3043_s24 = sld [smem:[#allocation19_spill]] }
 0x542   : > { %s3044_s25 = sld [smem:[#allocation20_spill]]  ;;  %s3045_s21 = smov %s2417_s22 }
 0x543   : > { %s3046_s22 = smov %s2421_s23  ;;  %33 = sbr.rel (!%p31_p3) target bundleno = 17 (0x11), region = 177 }
 0x546   : > { %s3047_s23 = smov %s3042_s27 }
 0x548   :  { %1608 = vsyncpa [#allocation4], 1 }
 0x549   :  { %1610 = vsyncpa [#allocation4 + $0x1], 1 }
 0x54a   :  { %1611 = vsyncpa [#allocation7], 1 }
 0x54b   :  { %1612 = vsyncpa [#allocation10], 1 }
 0x54c   :  { %1613 = vsyncpa [#allocation5], 1 }
 0x54d   :  { %1615 = vsyncpa [#allocation5 + $0x1], 1 }

</bundles_post_ra>
